<compile_context>
chip_gen: v6e
topology: v6e:2x2x1
jax: 0.10.0
libtpu: 0.0.40
codegen_flags: <defaults>
</compile_context>

<pallas_src>
import functools

import jax
import jax.numpy as jnp
from jax import lax
from jax.experimental import pallas as pl
from jax.experimental.pallas import tpu as pltpu

EPS = 1e-5
_MAX_BATCH_BLOCK = 8                 # unroll cap for the per-step sample loop
_VMEM_BUDGET = 8 * 1024 * 1024       # conservative per-call working-set budget (bytes)


# ----------------------------- pass 1: conv + global BN stats -----------------------------
def _conv_stats_kernel(xd_ref, w_ref, gamma_ref, beta_ref,          # inputs
                       y_ref, scale_ref, shift_ref,                 # outputs
                       sum_ref, sq_ref,                             # VMEM scratch
                       *, K, stride, L_out, count, NB):
    t = pl.program_id(0)

    @pl.when(t == 0)
    def _():
        sum_ref[...] = jnp.zeros_like(sum_ref)
        sq_ref[...] = jnp.zeros_like(sq_ref)

    c_out = y_ref.shape[1]
    local_sum = jnp.zeros((c_out, 1), jnp.float32)
    local_sq = jnp.zeros((c_out, 1), jnp.float32)

    # Conv1d as K static-tap matmuls over a stride-deinterleaved input:
    #   xd[i, r, ci, j] = x_pad[ci, stride*j + r]  =>  tap k reads plane r=k%stride at offset k//stride.
    for i in range(NB):                                    # NB small & static -> unrolled
        acc = jnp.zeros((c_out, L_out), jnp.float32)
        for k in range(K):                                 # K small & static -> unrolled
            xk = xd_ref[i, k % stride, :, pl.ds(k // stride, L_out)]   # (C_in, L_out)
            wk = w_ref[k]                                              # (C_out, C_in)
            acc = acc + jnp.dot(wk, xk, preferred_element_type=jnp.float32)
        y_ref[i] = acc                                                 # (C_out, L_out), lane-dense
        local_sum = local_sum + jnp.sum(acc, axis=-1, keepdims=True)
        local_sq = local_sq + jnp.sum(acc * acc, axis=-1, keepdims=True)

    # global (batch, length) per-channel statistics, accumulated across the sequential grid
    sum_ref[...] += local_sum
    sq_ref[...] += local_sq

    @pl.when(t == pl.num_programs(0) - 1)
    def _():
        inv = 1.0 / count
        mean = sum_ref[...] * inv
        var = jnp.maximum(sq_ref[...] * inv - mean * mean, 0.0)       # biased var, f32 accum
        scale = gamma_ref[...] * lax.rsqrt(var + EPS)
        scale_ref[...] = scale
        shift_ref[...] = beta_ref[...] - mean * scale


# ----------------------------- pass 2: fused BN apply + ReLU ------------------------------
def _bn_relu_kernel(y_ref, scale_ref, shift_ref, out_ref):
    # (NB, C_out, L_out) * (C_out, 1) broadcasts over the trailing dims.
    out_ref[...] = jnp.maximum(y_ref[...] * scale_ref[...] + shift_ref[...], 0.0)


def _pick_batch_block(n, per_sample_bytes):
    """Largest divisor of n (<= _MAX_BATCH_BLOCK) whose double-buffered block fits budget."""
    best = 1
    for cand in range(1, min(n, _MAX_BATCH_BLOCK) + 1):
        if n % cand:
            continue
        if 2 * cand * per_sample_bytes <= _VMEM_BUDGET:
            best = cand
    return best


def down_layer_forward(x, conv_w, conv_b, gamma, beta, *, stride, padding,
                       mxu_dtype=jnp.float32):
    """x: (N, C_in, L) f32. conv_w: (C_out, C_in, K). Returns (N, C_out, L_out) f32.

    Set mxu_dtype=jnp.bfloat16 on v6e/v7x for the fast MXU path (accumulation stays f32).
    """
    N, C_in, L = x.shape
    C_out, _, K = conv_w.shape
    L_out = (L + 2 * padding - K) // stride + 1

    # Conv bias is mathematically cancelled by training-mode BatchNorm's mean subtraction,
    # so it is not fed to the kernel at all (one fewer DMA + add).
    del conv_b

    L_pad = L + 2 * padding
    extra = (-L_pad) % stride
    L_pp = L_pad + extra
    J = L_pp // stride

    # --- glue: pad + stride-deinterleave (no K-fold im2col expansion) ---
    #   xd[n, r, ci, j] = x_pad[n, ci, stride*j + r]
    x_pad = jnp.pad(x, ((0, 0), (0, 0), (padding, padding + extra)))
    xd = x_pad.reshape(N, C_in, J, stride).transpose(0, 3, 1, 2).astype(mxu_dtype)

    # weight taps as (K, C_out, C_in): w_ref[k] is the k-th tap operand
    w_taps = jnp.transpose(conv_w, (2, 0, 1)).astype(mxu_dtype)
    gamma_c = gamma.reshape(C_out, 1).astype(jnp.float32)
    beta_c = beta.reshape(C_out, 1).astype(jnp.float32)

    # batch block size shared by both passes (divisor of N -> exact blocks, safe reduction)
    per_sample_bytes = 4 * (stride * C_in * J + 2 * C_out * L_out)
    NB = _pick_batch_block(N, per_sample_bytes)
    NT = N // NB

    count = float(N * L_out)
    kern1 = functools.partial(_conv_stats_kernel, K=K, stride=stride,
                              L_out=L_out, count=count, NB=NB)

    y, scale, shift = pl.pallas_call(
        kern1,
        grid=(NT,),
        out_shape=(
            jax.ShapeDtypeStruct((N, C_out, L_out), jnp.float32),
            jax.ShapeDtypeStruct((C_out, 1), jnp.float32),
            jax.ShapeDtypeStruct((C_out, 1), jnp.float32),
        ),
        in_specs=[
            pl.BlockSpec((NB, stride, C_in, J), lambda t: (t, 0, 0, 0)),
            pl.BlockSpec((K, C_out, C_in), lambda t: (0, 0, 0)),
            pl.BlockSpec((C_out, 1), lambda t: (0, 0)),
            pl.BlockSpec((C_out, 1), lambda t: (0, 0)),
        ],
        out_specs=(
            pl.BlockSpec((NB, C_out, L_out), lambda t: (t, 0, 0)),
            pl.BlockSpec((C_out, 1), lambda t: (0, 0)),
            pl.BlockSpec((C_out, 1), lambda t: (0, 0)),
        ),
        scratch_shapes=[pltpu.VMEM((C_out, 1), jnp.float32),
                        pltpu.VMEM((C_out, 1), jnp.float32)],
        compiler_params=pltpu.CompilerParams(
            dimension_semantics=("arbitrary",),          # sequential: global BN accumulation
            vmem_limit_bytes=32 * 1024 * 1024),
    )(xd, w_taps, gamma_c, beta_c)

    out = pl.pallas_call(
        _bn_relu_kernel,
        grid=(NT,),
        out_shape=jax.ShapeDtypeStruct((N, C_out, L_out), jnp.float32),
        in_specs=[
            pl.BlockSpec((NB, C_out, L_out), lambda t: (t, 0, 0)),
            pl.BlockSpec((C_out, 1), lambda t: (0, 0)),
            pl.BlockSpec((C_out, 1), lambda t: (0, 0)),
        ],
        out_specs=pl.BlockSpec((NB, C_out, L_out), lambda t: (t, 0, 0)),
        compiler_params=pltpu.CompilerParams(
            dimension_semantics=("parallel",),           # independent per-block -> megacore
            vmem_limit_bytes=32 * 1024 * 1024),
    )(y, scale, shift)

    # Output is already in PyTorch NCL layout: no transpose needed.
    return out


def _reference(x, conv_w, conv_b, gamma, beta, *, stride, padding):
    # pure-JAX reference (Conv1d WITH bias -> training-mode BN -> ReLU); the bias is
    # included here to demonstrate that dropping it in the kernel changes nothing.
    y = lax.conv_general_dilated(
        x, conv_w, window_strides=(stride,), padding=[(padding, padding)],
        dimension_numbers=("NCH", "OIH", "NCH"))
    y = y + conv_b[None, :, None]
    mean = jnp.mean(y, axis=(0, 2), keepdims=True)
    var = jnp.mean((y - mean) ** 2, axis=(0, 2), keepdims=True)
    y = (y - mean) * lax.rsqrt(var + EPS)
    y = y * gamma[None, :, None] + beta[None, :, None]
    return jnp.maximum(y, 0.0)


if __name__ == "__main__":
    # DownLayer(in_channels=4, out_channels=8, kernel_size=3, stride=2, padding=1)
    N, C_in, L = 2, 4, 16
    C_out, K, STRIDE, PAD = 8, 3, 2, 1

    key = jax.random.PRNGKey(0)
    kx, kw, kb, kg, kbe = jax.random.split(key, 5)

    x = jax.random.normal(kx, (N, C_in, L), dtype=jnp.float32)
    bound = 1.0 / (C_in * K) ** 0.5  # PyTorch Conv1d default init bound
    conv_w = jax.random.uniform(kw, (C_out, C_in, K), jnp.float32, -bound, bound)
    conv_b = jax.random.uniform(kb, (C_out,), jnp.float32, -bound, bound)
    gamma = 1.0 + 0.1 * jax.random.normal(kg, (C_out,), jnp.float32)
    beta = 0.1 * jax.random.normal(kbe, (C_out,), jnp.float32)

    out = down_layer_forward(x, conv_w, conv_b, gamma, beta, stride=STRIDE, padding=PAD)
    out = jax.block_until_ready(out)

    ref = _reference(x, conv_w, conv_b, gamma, beta, stride=STRIDE, padding=PAD)
    assert out.shape == (N, C_out, (L + 2 * PAD - K) // STRIDE + 1)
    assert jnp.allclose(out, ref, atol=1e-4, rtol=1e-4), float(jnp.max(jnp.abs(out - ref)))

    print("KERNEL_OK")
</pallas_src>

<mosaic_0001>
module attributes {stable_mosaic.version = 11 : i64} {
  func.func @_conv_stats_kernel(%arg0: i32, %arg1: memref<2x2x4x9xf32, #tpu.memory_space<vmem>>, %arg2: memref<3x8x4xf32, #tpu.memory_space<vmem>>, %arg3: memref<8x1xf32, #tpu.memory_space<vmem>>, %arg4: memref<8x1xf32, #tpu.memory_space<vmem>>, %arg5: memref<2x8x8xf32, #tpu.memory_space<vmem>>, %arg6: memref<8x1xf32, #tpu.memory_space<vmem>>, %arg7: memref<8x1xf32, #tpu.memory_space<vmem>>, %arg8: memref<8x1xf32, #tpu.memory_space<vmem>>, %arg9: memref<8x1xf32, #tpu.memory_space<vmem>>) attributes {dimension_semantics = [#tpu.dimension_semantics<arbitrary>], iteration_bounds = array<i64: 1>, scalar_prefetch = 0 : i64, scratch_operands = 2 : i64, tpu.core_type = #tpu.core_type<tc>, window_params = [{transform_indices = @transform_0, window_bounds = array<i64: 2, 2, 4, 9>}, {pipeline_mode = #tpu.pipeline_mode<synchronous>, transform_indices = @transform_1, window_bounds = array<i64: 3, 8, 4>}, {pipeline_mode = #tpu.pipeline_mode<synchronous>, transform_indices = @transform_2, window_bounds = array<i64: 8, 1>}, {pipeline_mode = #tpu.pipeline_mode<synchronous>, transform_indices = @transform_3, window_bounds = array<i64: 8, 1>}, {transform_indices = @transform_4, window_bounds = array<i64: 2, 8, 8>}, {pipeline_mode = #tpu.pipeline_mode<synchronous>, transform_indices = @transform_5, window_bounds = array<i64: 8, 1>}, {pipeline_mode = #tpu.pipeline_mode<synchronous>, transform_indices = @transform_6, window_bounds = array<i64: 8, 1>}]} {
    %c0_i32 = arith.constant 0 : i32
    %0 = arith.cmpi eq, %arg0, %c0_i32 : i32
    %1 = arith.extui %0 : i1 to i32
    %c0_i32_0 = arith.constant 0 : i32
    %2 = arith.cmpi ne, %1, %c0_i32_0 : i32
    scf.if %2 {
      %cst_69 = arith.constant 0.000000e+00 : f32
      %72 = vector.broadcast %cst_69 : f32 to vector<8x1xf32>
      %c0_70 = arith.constant 0 : index
      %c0_71 = arith.constant 0 : index
      %73 = vector.load %arg8[%c0_70, %c0_71] : memref<8x1xf32, #tpu.memory_space<vmem>>, vector<8x1xf32>
      tpu.vector_store %arg8[%c0_70, %c0_71], %72 {strides = array<i32>} : memref<8x1xf32, #tpu.memory_space<vmem>>, vector<8x1xf32>,
      %cst_72 = arith.constant 0.000000e+00 : f32
      %74 = vector.broadcast %cst_72 : f32 to vector<8x1xf32>
      %c0_73 = arith.constant 0 : index
      %c0_74 = arith.constant 0 : index
      %75 = vector.load %arg9[%c0_73, %c0_74] : memref<8x1xf32, #tpu.memory_space<vmem>>, vector<8x1xf32>
      tpu.vector_store %arg9[%c0_73, %c0_74], %74 {strides = array<i32>} : memref<8x1xf32, #tpu.memory_space<vmem>>, vector<8x1xf32>,
    } else {
    }
    %cst = arith.constant 0.000000e+00 : f32
    %3 = vector.broadcast %cst : f32 to vector<8x1xf32>
    %cst_1 = arith.constant 0.000000e+00 : f32
    %4 = vector.broadcast %cst_1 : f32 to vector<8x1xf32>
    %cst_2 = arith.constant 0.000000e+00 : f32
    %5 = vector.broadcast %cst_2 : f32 to vector<8x8xf32>
    %c0 = arith.constant 0 : index
    %c0_3 = arith.constant 0 : index
    %c0_4 = arith.constant 0 : index
    %c0_5 = arith.constant 0 : index
    %6 = vector.load %arg1[%c0, %c0_3, %c0_4, %c0_5] : memref<2x2x4x9xf32, #tpu.memory_space<vmem>>, vector<1x1x4x8xf32>
    %7 = vector.shape_cast %6 : vector<1x1x4x8xf32> to vector<4x8xf32>
    %c0_6 = arith.constant 0 : index
    %c0_7 = arith.constant 0 : index
    %c0_8 = arith.constant 0 : index
    %8 = vector.load %arg2[%c0_6, %c0_7, %c0_8] : memref<3x8x4xf32, #tpu.memory_space<vmem>>, vector<1x8x4xf32>
    %9 = vector.shape_cast %8 : vector<1x8x4xf32> to vector<8x4xf32>
    %cst_9 = arith.constant dense<0.000000e+00> : vector<8x8xf32>
    %10 = tpu.matmul %9, %7, %cst_9 {dimension_numbers = #tpu.dot_dimension_numbers<[1], [0], [0], [1], [0, 0, 1, 1], [], []>} : vector<8x4xf32>, vector<4x8xf32>, vector<8x8xf32> -> vector<8x8xf32>
    %11 = arith.addf %5, %10 : vector<8x8xf32>
    %c0_10 = arith.constant 0 : index
    %c1 = arith.constant 1 : index
    %c0_11 = arith.constant 0 : index
    %c0_12 = arith.constant 0 : index
    %12 = vector.load %arg1[%c0_10, %c1, %c0_11, %c0_12] : memref<2x2x4x9xf32, #tpu.memory_space<vmem>>, vector<1x1x4x8xf32>
    %13 = vector.shape_cast %12 : vector<1x1x4x8xf32> to vector<4x8xf32>
    %c1_13 = arith.constant 1 : index
    %c0_14 = arith.constant 0 : index
    %c0_15 = arith.constant 0 : index
    %14 = vector.load %arg2[%c1_13, %c0_14, %c0_15] : memref<3x8x4xf32, #tpu.memory_space<vmem>>, vector<1x8x4xf32>
    %15 = vector.shape_cast %14 : vector<1x8x4xf32> to vector<8x4xf32>
    %cst_16 = arith.constant dense<0.000000e+00> : vector<8x8xf32>
    %16 = tpu.matmul %15, %13, %cst_16 {dimension_numbers = #tpu.dot_dimension_numbers<[1], [0], [0], [1], [0, 0, 1, 1], [], []>} : vector<8x4xf32>, vector<4x8xf32>, vector<8x8xf32> -> vector<8x8xf32>
    %17 = arith.addf %11, %16 : vector<8x8xf32>
    %c0_17 = arith.constant 0 : index
    %c0_18 = arith.constant 0 : index
    %c0_19 = arith.constant 0 : index
    %c1_20 = arith.constant 1 : index
    %18 = vector.load %arg1[%c0_17, %c0_18, %c0_19, %c1_20] : memref<2x2x4x9xf32, #tpu.memory_space<vmem>>, vector<1x1x4x8xf32>
    %19 = vector.shape_cast %18 : vector<1x1x4x8xf32> to vector<4x8xf32>
    %c2 = arith.constant 2 : index
    %c0_21 = arith.constant 0 : index
    %c0_22 = arith.constant 0 : index
    %20 = vector.load %arg2[%c2, %c0_21, %c0_22] : memref<3x8x4xf32, #tpu.memory_space<vmem>>, vector<1x8x4xf32>
    %21 = vector.shape_cast %20 : vector<1x8x4xf32> to vector<8x4xf32>
    %cst_23 = arith.constant dense<0.000000e+00> : vector<8x8xf32>
    %22 = tpu.matmul %21, %19, %cst_23 {dimension_numbers = #tpu.dot_dimension_numbers<[1], [0], [0], [1], [0, 0, 1, 1], [], []>} : vector<8x4xf32>, vector<4x8xf32>, vector<8x8xf32> -> vector<8x8xf32>
    %23 = arith.addf %17, %22 : vector<8x8xf32>
    %c0_24 = arith.constant 0 : index
    %c0_25 = arith.constant 0 : index
    %c0_26 = arith.constant 0 : index
    %24 = vector.load %arg5[%c0_24, %c0_25, %c0_26] : memref<2x8x8xf32, #tpu.memory_space<vmem>>, vector<1x8x8xf32>
    %25 = vector.shape_cast %24 : vector<1x8x8xf32> to vector<8x8xf32>
    %26 = vector.shape_cast %23 : vector<8x8xf32> to vector<1x8x8xf32>
    tpu.vector_store %arg5[%c0_24, %c0_25, %c0_26], %26 {strides = array<i32>} : memref<2x8x8xf32, #tpu.memory_space<vmem>>, vector<1x8x8xf32>,
    %cst_27 = arith.constant dense<0.000000e+00> : vector<8xf32>
    %27 = vector.multi_reduction <add>, %23, %cst_27 [1] : vector<8x8xf32> to vector<8xf32>
    %28 = vector.shape_cast %27 : vector<8xf32> to vector<8x1xf32>
    %29 = arith.addf %3, %28 : vector<8x1xf32>
    %30 = arith.mulf %23, %23 : vector<8x8xf32>
    %cst_28 = arith.constant dense<0.000000e+00> : vector<8xf32>
    %31 = vector.multi_reduction <add>, %30, %cst_28 [1] : vector<8x8xf32> to vector<8xf32>
    %32 = vector.shape_cast %31 : vector<8xf32> to vector<8x1xf32>
    %33 = arith.addf %4, %32 : vector<8x1xf32>
    %cst_29 = arith.constant 0.000000e+00 : f32
    %34 = vector.broadcast %cst_29 : f32 to vector<8x8xf32>
    %c1_30 = arith.constant 1 : index
    %c0_31 = arith.constant 0 : index
    %c0_32 = arith.constant 0 : index
    %c0_33 = arith.constant 0 : index
    %35 = vector.load %arg1[%c1_30, %c0_31, %c0_32, %c0_33] : memref<2x2x4x9xf32, #tpu.memory_space<vmem>>, vector<1x1x4x8xf32>
    %36 = vector.shape_cast %35 : vector<1x1x4x8xf32> to vector<4x8xf32>
    %c0_34 = arith.constant 0 : index
    %c0_35 = arith.constant 0 : index
    %c0_36 = arith.constant 0 : index
    %37 = vector.load %arg2[%c0_34, %c0_35, %c0_36] : memref<3x8x4xf32, #tpu.memory_space<vmem>>, vector<1x8x4xf32>
    %38 = vector.shape_cast %37 : vector<1x8x4xf32> to vector<8x4xf32>
    %cst_37 = arith.constant dense<0.000000e+00> : vector<8x8xf32>
    %39 = tpu.matmul %38, %36, %cst_37 {dimension_numbers = #tpu.dot_dimension_numbers<[1], [0], [0], [1], [0, 0, 1, 1], [], []>} : vector<8x4xf32>, vector<4x8xf32>, vector<8x8xf32> -> vector<8x8xf32>
    %40 = arith.addf %34, %39 : vector<8x8xf32>
    %c1_38 = arith.constant 1 : index
    %c1_39 = arith.constant 1 : index
    %c0_40 = arith.constant 0 : index
    %c0_41 = arith.constant 0 : index
    %41 = vector.load %arg1[%c1_38, %c1_39, %c0_40, %c0_41] : memref<2x2x4x9xf32, #tpu.memory_space<vmem>>, vector<1x1x4x8xf32>
    %42 = vector.shape_cast %41 : vector<1x1x4x8xf32> to vector<4x8xf32>
    %c1_42 = arith.constant 1 : index
    %c0_43 = arith.constant 0 : index
    %c0_44 = arith.constant 0 : index
    %43 = vector.load %arg2[%c1_42, %c0_43, %c0_44] : memref<3x8x4xf32, #tpu.memory_space<vmem>>, vector<1x8x4xf32>
    %44 = vector.shape_cast %43 : vector<1x8x4xf32> to vector<8x4xf32>
    %cst_45 = arith.constant dense<0.000000e+00> : vector<8x8xf32>
    %45 = tpu.matmul %44, %42, %cst_45 {dimension_numbers = #tpu.dot_dimension_numbers<[1], [0], [0], [1], [0, 0, 1, 1], [], []>} : vector<8x4xf32>, vector<4x8xf32>, vector<8x8xf32> -> vector<8x8xf32>
    %46 = arith.addf %40, %45 : vector<8x8xf32>
    %c1_46 = arith.constant 1 : index
    %c0_47 = arith.constant 0 : index
    %c0_48 = arith.constant 0 : index
    %c1_49 = arith.constant 1 : index
    %47 = vector.load %arg1[%c1_46, %c0_47, %c0_48, %c1_49] : memref<2x2x4x9xf32, #tpu.memory_space<vmem>>, vector<1x1x4x8xf32>
    %48 = vector.shape_cast %47 : vector<1x1x4x8xf32> to vector<4x8xf32>
    %c2_50 = arith.constant 2 : index
    %c0_51 = arith.constant 0 : index
    %c0_52 = arith.constant 0 : index
    %49 = vector.load %arg2[%c2_50, %c0_51, %c0_52] : memref<3x8x4xf32, #tpu.memory_space<vmem>>, vector<1x8x4xf32>
    %50 = vector.shape_cast %49 : vector<1x8x4xf32> to vector<8x4xf32>
    %cst_53 = arith.constant dense<0.000000e+00> : vector<8x8xf32>
    %51 = tpu.matmul %50, %48, %cst_53 {dimension_numbers = #tpu.dot_dimension_numbers<[1], [0], [0], [1], [0, 0, 1, 1], [], []>} : vector<8x4xf32>, vector<4x8xf32>, vector<8x8xf32> -> vector<8x8xf32>
    %52 = arith.addf %46, %51 : vector<8x8xf32>
    %c1_54 = arith.constant 1 : index
    %c0_55 = arith.constant 0 : index
    %c0_56 = arith.constant 0 : index
    %53 = vector.load %arg5[%c1_54, %c0_55, %c0_56] : memref<2x8x8xf32, #tpu.memory_space<vmem>>, vector<1x8x8xf32>
    %54 = vector.shape_cast %53 : vector<1x8x8xf32> to vector<8x8xf32>
    %55 = vector.shape_cast %52 : vector<8x8xf32> to vector<1x8x8xf32>
    tpu.vector_store %arg5[%c1_54, %c0_55, %c0_56], %55 {strides = array<i32>} : memref<2x8x8xf32, #tpu.memory_space<vmem>>, vector<1x8x8xf32>,
    %cst_57 = arith.constant dense<0.000000e+00> : vector<8xf32>
    %56 = vector.multi_reduction <add>, %52, %cst_57 [1] : vector<8x8xf32> to vector<8xf32>
    %57 = vector.shape_cast %56 : vector<8xf32> to vector<8x1xf32>
    %58 = arith.addf %29, %57 : vector<8x1xf32>
    %59 = arith.mulf %52, %52 : vector<8x8xf32>
    %cst_58 = arith.constant dense<0.000000e+00> : vector<8xf32>
    %60 = vector.multi_reduction <add>, %59, %cst_58 [1] : vector<8x8xf32> to vector<8xf32>
    %61 = vector.shape_cast %60 : vector<8xf32> to vector<8x1xf32>
    %62 = arith.addf %33, %61 : vector<8x1xf32>
    %c0_59 = arith.constant 0 : index
    %c0_60 = arith.constant 0 : index
    %63 = vector.load %arg8[%c0_59, %c0_60] : memref<8x1xf32, #tpu.memory_space<vmem>>, vector<8x1xf32>
    %64 = arith.addf %63, %58 : vector<8x1xf32>
    %c0_61 = arith.constant 0 : index
    %c0_62 = arith.constant 0 : index
    %65 = vector.load %arg8[%c0_61, %c0_62] : memref<8x1xf32, #tpu.memory_space<vmem>>, vector<8x1xf32>
    tpu.vector_store %arg8[%c0_61, %c0_62], %64 {strides = array<i32>} : memref<8x1xf32, #tpu.memory_space<vmem>>, vector<8x1xf32>,
    %c0_63 = arith.constant 0 : index
    %c0_64 = arith.constant 0 : index
    %66 = vector.load %arg9[%c0_63, %c0_64] : memref<8x1xf32, #tpu.memory_space<vmem>>, vector<8x1xf32>
    %67 = arith.addf %66, %62 : vector<8x1xf32>
    %c0_65 = arith.constant 0 : index
    %c0_66 = arith.constant 0 : index
    %68 = vector.load %arg9[%c0_65, %c0_66] : memref<8x1xf32, #tpu.memory_space<vmem>>, vector<8x1xf32>
    tpu.vector_store %arg9[%c0_65, %c0_66], %67 {strides = array<i32>} : memref<8x1xf32, #tpu.memory_space<vmem>>, vector<8x1xf32>,
    %c0_i32_67 = arith.constant 0 : i32
    %69 = arith.cmpi eq, %arg0, %c0_i32_67 : i32
    %70 = arith.extui %69 : i1 to i32
    %c0_i32_68 = arith.constant 0 : i32
    %71 = arith.cmpi ne, %70, %c0_i32_68 : i32
    scf.if %71 {
      %c0_69 = arith.constant 0 : index
      %c0_70 = arith.constant 0 : index
      %72 = vector.load %arg8[%c0_69, %c0_70] : memref<8x1xf32, #tpu.memory_space<vmem>>, vector<8x1xf32>
      %cst_71 = arith.constant 6.250000e-02 : f32
      %73 = vector.broadcast %cst_71 : f32 to vector<8x1xf32>
      %74 = arith.mulf %72, %73 : vector<8x1xf32>
      %c0_72 = arith.constant 0 : index
      %c0_73 = arith.constant 0 : index
      %75 = vector.load %arg9[%c0_72, %c0_73] : memref<8x1xf32, #tpu.memory_space<vmem>>, vector<8x1xf32>
      %cst_74 = arith.constant 6.250000e-02 : f32
      %76 = vector.broadcast %cst_74 : f32 to vector<8x1xf32>
      %77 = arith.mulf %75, %76 : vector<8x1xf32>
      %78 = arith.mulf %74, %74 : vector<8x1xf32>
      %79 = arith.subf %77, %78 : vector<8x1xf32>
      %cst_75 = arith.constant 0.000000e+00 : f32
      %80 = vector.broadcast %cst_75 : f32 to vector<8x1xf32>
      %81 = arith.maximumf %79, %80 : vector<8x1xf32>
      %c0_76 = arith.constant 0 : index
      %c0_77 = arith.constant 0 : index
      %82 = vector.load %arg3[%c0_76, %c0_77] : memref<8x1xf32, #tpu.memory_space<vmem>>, vector<8x1xf32>
      %cst_78 = arith.constant 9.99999974E-6 : f32
      %83 = vector.broadcast %cst_78 : f32 to vector<8x1xf32>
      %84 = arith.addf %81, %83 : vector<8x1xf32>
      %85 = math.rsqrt %84 : vector<8x1xf32>
      %86 = arith.mulf %82, %85 : vector<8x1xf32>
      %c0_79 = arith.constant 0 : index
      %c0_80 = arith.constant 0 : index
      %87 = vector.load %arg6[%c0_79, %c0_80] : memref<8x1xf32, #tpu.memory_space<vmem>>, vector<8x1xf32>
      tpu.vector_store %arg6[%c0_79, %c0_80], %86 {strides = array<i32>} : memref<8x1xf32, #tpu.memory_space<vmem>>, vector<8x1xf32>,
      %c0_81 = arith.constant 0 : index
      %c0_82 = arith.constant 0 : index
      %88 = vector.load %arg4[%c0_81, %c0_82] : memref<8x1xf32, #tpu.memory_space<vmem>>, vector<8x1xf32>
      %89 = arith.mulf %74, %86 : vector<8x1xf32>
      %90 = arith.subf %88, %89 : vector<8x1xf32>
      %c0_83 = arith.constant 0 : index
      %c0_84 = arith.constant 0 : index
      %91 = vector.load %arg7[%c0_83, %c0_84] : memref<8x1xf32, #tpu.memory_space<vmem>>, vector<8x1xf32>
      tpu.vector_store %arg7[%c0_83, %c0_84], %90 {strides = array<i32>} : memref<8x1xf32, #tpu.memory_space<vmem>>, vector<8x1xf32>,
    } else {
    }
    return
  }
  func.func @transform_0(%arg0: i32) -> (i32, i32, i32, i32) {
    %c0_i32 = arith.constant 0 : i32
    %c0_i32_0 = arith.constant 0 : i32
    %c0_i32_1 = arith.constant 0 : i32
    %c0_i32_2 = arith.constant 0 : i32
    return %arg0, %c0_i32, %c0_i32_0, %c0_i32_1 : i32, i32, i32, i32
  }
  func.func @transform_1(%arg0: i32) -> (i32, i32, i32) {
    %c0_i32 = arith.constant 0 : i32
    %c0_i32_0 = arith.constant 0 : i32
    %c0_i32_1 = arith.constant 0 : i32
    %c0_i32_2 = arith.constant 0 : i32
    return %c0_i32, %c0_i32_0, %c0_i32_1 : i32, i32, i32
  }
  func.func @transform_2(%arg0: i32) -> (i32, i32) {
    %c0_i32 = arith.constant 0 : i32
    %c0_i32_0 = arith.constant 0 : i32
    %c0_i32_1 = arith.constant 0 : i32
    return %c0_i32, %c0_i32_0 : i32, i32
  }
  func.func @transform_3(%arg0: i32) -> (i32, i32) {
    %c0_i32 = arith.constant 0 : i32
    %c0_i32_0 = arith.constant 0 : i32
    %c0_i32_1 = arith.constant 0 : i32
    return %c0_i32, %c0_i32_0 : i32, i32
  }
  func.func @transform_4(%arg0: i32) -> (i32, i32, i32) {
    %c0_i32 = arith.constant 0 : i32
    %c0_i32_0 = arith.constant 0 : i32
    %c0_i32_1 = arith.constant 0 : i32
    return %arg0, %c0_i32, %c0_i32_0 : i32, i32, i32
  }
  func.func @transform_5(%arg0: i32) -> (i32, i32) {
    %c0_i32 = arith.constant 0 : i32
    %c0_i32_0 = arith.constant 0 : i32
    %c0_i32_1 = arith.constant 0 : i32
    return %c0_i32, %c0_i32_0 : i32, i32
  }
  func.func @transform_6(%arg0: i32) -> (i32, i32) {
    %c0_i32 = arith.constant 0 : i32
    %c0_i32_0 = arith.constant 0 : i32
    %c0_i32_1 = arith.constant 0 : i32
    return %c0_i32, %c0_i32_0 : i32, i32
  }
}

</mosaic_0001>

<bundles_post_ra>
// kernel: tpu_custom_call.1
= control target key start
LH: loop header
LB: loop body
LE: loop exit
PB: predicated region body
PF: predicated region fallthrough
CT: control target
= control target key end

     0   :  { %s668_s23 = smov 127   ;;  %v669_v1 = vmov 0.0   ;;  %vm38_vm0 = vcmask 1043456   ;;  %vm34_vm1 = vcmask 31744   ;;  %vm670_vm2 = vmmov 0   ;;  %s789_s0 = inlined_call_operand.vmem [shape: f32[2,2,4,9], index: 0, kind: input, shape index: {}]   ;;  %s790_s1 = inlined_call_operand.vmem [shape: f32[3,8,4], index: 1, kind: input, shape index: {}]   ;;  %s791_s2 = inlined_call_operand.vmem [shape: f32[8,1], index: 2, kind: input, shape index: {}]   ;;  %s792_s3 = inlined_call_operand.vmem [shape: f32[8,1], index: 3, kind: input, shape index: {}]   ;;  %s793_s4 = inlined_call_operand.hbm [shape: f32[2,8,8], index: 4, kind: output, shape index: {0}]   ;;  %s794_s5 = inlined_call_operand.vmem [shape: f32[8,1], index: 5, kind: output, shape index: {1}]   ;;  %s795_s6 = inlined_call_operand.vmem [shape: f32[8,1], index: 6, kind: output, shape index: {2}]  }
   0x1   :  { %v28_v0 = vld [vmem:[%s789_s0] sm:$0xf]  ;;  %608 = vmatprep.subr.mxu0 %v669_v1  ;;  %v577_v2 = vld [vmem:[%s789_s0 + $0x4] sm:$0xf]  ;;  %v578_v3 = vld [vmem:[%s790_s1 + $0x8] sm:$0xff]  ;;  %610 = vmatprep.mubr.msk.f32.mxu0 %vm670_vm2, %v669_v1 }
   0x2   :  { %190 = vrot.lane.b32.xlu0 %v28_v0, %s668_s23  ;;  %v586_v4 = vld [vmem:[%s789_s0 + $0x8] sm:$0xf]  ;;  %609 = vmatpush3.msk.msra.mxu0 %vm38_vm0, %v577_v2  ;;  %v29_v5 = vld [vmem:[%s790_s1] sm:$0xff] }
   0x3   :  { %611 = vmatmul.mubr.msk.f32.vlgmr.msra.gmra.mxu0 %vm34_vm1, %v578_v3  ;;  %613 = vmatprep.subr.mxu1 %v669_v1 }
   0x4   :  { %12 = vsyncpa [#allocation5], 0  ;;  %614 = vmatpush3.msk.msra.mxu1 %vm38_vm0, %v28_v0  ;;  %615 = vmatprep.mubr.msk.f32.mxu1 %vm670_vm2, %v669_v1  ;;  %v587_v6 = vld [vmem:[%s789_s0 + $0xc] sm:$0xf]  ;;  %v583_v7 = vld [vmem:[%s790_s1 + $0x10] sm:$0xff]  ;;  %vm268_vm3 = vcmask 64512  }
   0x5   :  { %616 = vmatmul.mubr.msk.f32.vlgmr.msra.gmra.mxu1 %vm34_vm1, %v29_v5  ;;  %618 = vmatprep.subr.mxu0 %v669_v1  ;;  %vm25_vm4 = vcmask 7168   ;;  %s671_s1 = smov [#allocation4]  }
   0x6   :  { %438 = vrot.lane.b32.xlu0 %v586_v4, %s668_s23  ;;  %620 = vmatprep.mubr.msk.f32.mxu0 %vm670_vm2, %v669_v1  ;;  %26 = vst.msk [vmem:[#allocation2] sm:$0xff] %vm25_vm4, %v669_v1  ;;  %27 = vst.msk [vmem:[#allocation3] sm:$0xff] %vm25_vm4, %v669_v1  ;;  %s558_s11 = sshll.u32 %s671_s1, 4  ;;  %s559_s11 = int_to_ptr.vmem [resolvable:$true] %s558_s11 }
   0x7   :  { %623 = vmatprep.subr.mxu1 %v669_v1  ;;  %625 = vmatprep.mubr.msk.f32.mxu1 %vm670_vm2, %v669_v1  ;;  %s646_s12 = scalar_lea.vmem %s559_s11, 256  ;;  %p651_p1 = scmp.lt.s32.totalorder %s559_s11, %s559_s11 }
   0x8   :  { %624 = vmatpush3.msk.msra.mxu1 %vm38_vm0, %v587_v6  ;;  %p647_p0 = scmp.ne.s32.totalorder %s559_s11, %s646_s12  ;;  %p652_p2 = scmp.lt.s32.totalorder %s646_s12, %s646_s12 }
   0x9   :  { %626 = vmatmul.mubr.msk.f32.vlgmr.msra.gmra.mxu1 %vm34_vm1, %v578_v3  ;;  %633 = vmatprep.subr.mxu1 %v669_v1 }
   0xa   :  { %635 = vmatprep.mubr.msk.f32.mxu1 %vm670_vm2, %v669_v1  ;;  %p653_p3 = por %p652_p2, %p651_p1 }
   0xc   :  { %p654_p4 = pnand %p653_p3, %p647_p0 }
  0x74   :  { %v191_v8 = vpop.permute.xlu0 %190 }
  0x75   :  { %619 = vmatpush3.msk.msra.mxu0 %vm38_vm0, %v191_v8 }
  0x76   :  { %621 = vmatmul.mubr.msk.f32.vlgmr.msra.gmra.mxu0 %vm34_vm1, %v583_v7  ;;  %628 = vmatprep.subr.mxu0 %v669_v1 }
  0x77   :  { %629 = vmatpush3.msk.msra.mxu0 %vm38_vm0, %v586_v4  ;;  %630 = vmatprep.mubr.msk.f32.mxu0 %vm670_vm2, %v669_v1 }
  0x78   :  { %v439_v9 = vpop.permute.xlu0 %438 }
  0x79   :  { %634 = vmatpush3.msk.msra.mxu1 %vm38_vm0, %v439_v9 }
  0x7a   :  { %631 = vmatmul.mubr.msk.f32.vlgmr.msra.gmra.mxu0 %vm34_vm1, %v29_v5  ;;  %636 = vmatmul.mubr.msk.f32.vlgmr.msra.gmra.mxu1 %vm34_vm1, %v583_v7 }
  0xc3   :  { %v108_v10 = vpop.f32.mrf.mxu0 }
  0xc5   :  { %v612_v11 = vpop.f32.mrf.mxu0  ;;  %v184_v12 = vpop.f32.mrf.mxu1 }
  0xc6   :  { %v185_v13 = vadd.f32 %v184_v12, %v108_v10 }
  0xc7   :  { %v617_v14 = vpop.f32.mrf.mxu1 }
  0xc9   :  { %v357_v15 = vpop.f32.mrf.mxu1 }
  0xcb   :  { %v627_v16 = vpop.f32.mrf.mxu1 }
 0x136   :  { %v263_v17 = vpop.f32.mrf.mxu0 }
 0x137   :  { %v267_v18 = vadd.f32 %v263_v17, %v185_v13 }
 0x138   :  { %v622_v19 = vpop.f32.mrf.mxu0 }
 0x139   :  { %269 = vst.msk [vmem:[#allocation4] sm:$0xff] %vm268_vm3, %v267_v18  ;;  %v270_v20 = vsel %vm268_vm3, %v267_v18, 0.0  ;;  %v274_v21 = vmul.f32 %v267_v18, %v267_v18 }
 0x13a   :  { %v433_v22 = vpop.f32.mrf.mxu0  ;;  %271 = vadd.xlane.f32.xlu1 %v270_v20  ;;  %v511_v23 = vpop.f32.mrf.mxu1 }
 0x13b   :  { %v434_v24 = vadd.f32 %v433_v22, %v357_v15  ;;  %v275_v25 = vsel %vm268_vm3, %v274_v21, 0.0 }
 0x13c   :  { %276 = vadd.xlane.f32.xlu0 %v275_v25  ;;  %v632_v26 = vpop.f32.mrf.mxu0  ;;  %v637_v27 = vpop.f32.mrf.mxu1 }
 0x13d   :  { %v515_v28 = vadd.f32 %v511_v23, %v434_v24 }
 0x13f   :  { %517 = vst.msk [vmem:[#allocation4 + $0x8] sm:$0xff] %vm268_vm3, %v515_v28  ;;  %v518_v29 = vsel %vm268_vm3, %v515_v28, 0.0  ;;  %v522_v30 = vmul.f32 %v515_v28, %v515_v28 }
 0x140   :  { %519 = vadd.xlane.f32.xlu1 %v518_v29 }
 0x141   :  { %v523_v31 = vsel %vm268_vm3, %v522_v30, 0.0 }
 0x144   :  { %524 = vadd.xlane.f32.xlu1 %v523_v31 }
 0x145   :  { %657 = shalt.err (!%p654_p4)
}
 0x146   :  { %s672_s13 = smov 128   ;;  %s673_s14 = smov 8   ;;  %v527_v34 = vld [vmem:[#allocation2] sm:$0xff]  ;;  %v531_v39 = vld [vmem:[#allocation3] sm:$0xff] }
 0x147   :  { %564 = dma.vmem_to_hbm [thread:$0]  %s559_s11, 256, %s793_s4, [#allocation5], %s672_s13, %s672_s13, %s673_s14  }
 0x148   :  { %v544_v50 = vld [vmem:[%s791_s2] sm:$0xff] }
 0x149   :  { %v549_v53 = vld [vmem:[%s792_s3] sm:$0xff] }
 0x1c3   :  { %v272_v32 = vpop.xlane.xlu1 %271 }
 0x1c5   :  { %v277_v37 = vpop.xlane.xlu0 %276 }
 0x1c9   :  { %v520_v33 = vpop.xlane.xlu1 %519 }
 0x1ca   :  { %v521_v35 = vadd.f32 %v520_v33, %v272_v32 }
 0x1cc   :  { %v528_v36 = vadd.f32 %v527_v34, %v521_v35 }
 0x1cd   :  { %v525_v38 = vpop.xlane.xlu1 %524 }
 0x1ce   :  { %530 = vst.msk [vmem:[#allocation2] sm:$0xff] %vm25_vm4, %v528_v36  ;;  %v526_v40 = vadd.f32 %v525_v38, %v277_v37 }
 0x1d0   :  { %v532_v41 = vadd.f32 %v531_v39, %v526_v40 }
 0x1d2   :  { %533 = vst.msk [vmem:[#allocation3] sm:$0xff] %vm25_vm4, %v532_v41 }
 0x1d5   :  { %v537_v42 = vld [vmem:[#allocation2] sm:$0xff] }
 0x1d6   :  { %v538_v43 = vmul.f32 0.0625, %v537_v42 }
 0x1d8   :  { %v541_v45 = vmul.f32 %v538_v43, %v538_v43 }
 0x1d9   :  { %v539_v44 = vld [vmem:[#allocation3] sm:$0xff] }
 0x1da   :  { %v540_v46 = vmul.f32 0.0625, %v539_v44 }
 0x1dc   :  { %v542_v47 = vsub.f32 %v540_v46, %v541_v45 }
 0x1de   :  { %v543_v48 = vmax.f32 %v542_v47, 0.0 }
 0x1e0   :  { %v545_v49 = vadd.f32 1e-05, %v543_v48 }
 0x1e2   :  { %644 = vrsqrt.f32 %v545_v49 }
 0x1ef   :  { %v645_v51 = vpop.eup %644 }
 0x1f0   :  { %v547_v52 = vmul.f32 %v645_v51, %v544_v50 }
 0x1f2   :  { %548 = vst.msk [vmem:[%s794_s5] sm:$0xff] %vm25_vm4, %v547_v52  ;;  %v550_v54 = vmul.f32 %v547_v52, %v538_v43 }
 0x1f4   :  { %v551_v55 = vsub.f32 %v549_v53, %v550_v54 }
 0x1f6   :  { %552 = vst.msk [vmem:[%s795_s6] sm:$0xff] %vm25_vm4, %v551_v55 }
 0x1f7   :  { %666 = dma.done.wait [#allocation5], 256  }
 0x1f8   :  { %667 = vsyncadd [#allocation5], 4294967040 }
 0x1f9   :  { %576 = vsyncpa [#allocation5], 1 }

</bundles_post_ra>
